<compile_context>
chip_gen: v5e
topology: v5e:2x2
jax: 0.10.0
libtpu: 0.0.40
codegen_flags: <defaults>
</compile_context>

<pallas_src>
import jax
import jax.numpy as jnp
from jax.experimental import pallas as pl
from jax.experimental.pallas import tpu as pltpu

PACK = 8            # batch rows packed per vreg row (sublane count)
SMALL_B = 1024      # below this, single no-grid call (runs on one TC on v7x)


def _mlp_kernel(x_ref, w1_ref, b1_ref, w2_ref, b2_ref, o_ref):
    # x: [Bt, Fin], w1: [Fin, H], b1: [1, H], w2: [H, Fout], b2: [1, Fout]
    h = jnp.dot(x_ref[...], w1_ref[...], preferred_element_type=jnp.float32)
    h = jnp.maximum(h + b1_ref[...], 0.0)                                # ReLU
    y = jnp.dot(h, w2_ref[...], preferred_element_type=jnp.float32) + b2_ref[...]
    # TODO(synk): dropout is identity (eval mode); training-mode dropout would
    # need pltpu.prng_seed + pltpu.prng_random_bits for a Bernoulli mask.
    o_ref[...] = y.astype(o_ref.dtype)


def pack_params(w1, b1, w2, b2, pack=PACK):
    """Build 8-way block-diagonal weights so all matmuls/stores are lane-dense.

    Precompute ONCE and pass via `packed_params=` in the hot loop.
    """
    eye = jnp.eye(pack, dtype=w1.dtype)
    w1_bd = jnp.kron(eye, w1)                       # (pack*F, pack*P)
    w2_bd = jnp.kron(eye, w2)                       # (pack*P, pack*L)
    b1_bd = jnp.tile(b1.reshape(1, -1), (1, pack))  # (1, pack*P)
    b2_bd = jnp.tile(b2.reshape(1, -1), (1, pack))  # (1, pack*L)
    return w1_bd, b1_bd, w2_bd, b2_bd


def _round_up(x, m):
    return ((x + m - 1) // m) * m


def language_mlp1_forward(lang_vector, w1, b1, w2, b2, *,
                          block_b=8192, packed_params=None):
    """lang_vector: [B, num_language_features] -> [B, low_rank_dim]."""
    B, F = lang_vector.shape
    P = w1.shape[1]
    L = w2.shape[1]
    dtype = lang_vector.dtype
    # TODO(synk): optionally stream x / out as bf16 (halves HBM traffic, ~2x at
    # large B) if the downstream consumer tolerates bf16 activations.

    if B <= SMALL_B:
        # --- small-batch path: single call, whole arrays in VMEM, no grid ---
        vmem = pl.BlockSpec(memory_space=pltpu.MemorySpace.VMEM)
        ce = pl.CostEstimate(
            flops=2 * B * (F * P + P * L), transcendentals=0,
            bytes_accessed=4 * (B * (F + L) + F * P + P + P * L + L))
        return pl.pallas_call(
            _mlp_kernel,
            out_shape=jax.ShapeDtypeStruct((B, L), dtype),
            in_specs=[vmem, vmem, vmem, vmem, vmem],
            out_specs=vmem,
            cost_estimate=ce,
        )(lang_vector, w1, b1, w2, b2)

    # --- large-batch path: lane-packed block-diagonal weights, tiled over B ---
    if packed_params is None:
        packed_params = pack_params(w1, b1, w2, b2)   # cheap; cache in real use
    w1_bd, b1_bd, w2_bd, b2_bd = packed_params

    pad = (-B) % PACK
    x = lang_vector
    if pad:
        # Rare tail case (<8 extra rows): pad so the packing reshape is free.
        x = jnp.pad(x, ((0, pad), (0, 0)))
    Bp = B + pad
    Rp = Bp // PACK                                   # packed rows
    x_packed = x.reshape(Rp, PACK * F)                # free row-major reshape

    # Block over packed rows: multiple of 8 (sublane constraint) and capped so
    # the grid keeps >= 2 blocks (both v7x TCs get work; no-op on v5e/v6e).
    block_packed = _round_up(max(1, block_b // PACK), 8)
    block_packed = min(block_packed, _round_up(pl.cdiv(Rp, 2), 8))
    n_blocks = pl.cdiv(Rp, block_packed)              # last block may be ragged

    ce = pl.CostEstimate(
        flops=2 * Rp * ((PACK * F) * (PACK * P) + (PACK * P) * (PACK * L)),
        transcendentals=0,
        bytes_accessed=4 * (Bp * (F + L) + w1_bd.size + b1_bd.size
                            + w2_bd.size + b2_bd.size))

    out_packed = pl.pallas_call(
        _mlp_kernel,
        out_shape=jax.ShapeDtypeStruct((Rp, PACK * L), dtype),
        grid_spec=pl.GridSpec(
            grid=(n_blocks,),
            in_specs=[
                pl.BlockSpec((block_packed, PACK * F), lambda i: (i, 0)),  # x streamed
                pl.BlockSpec(w1_bd.shape, lambda i: (0, 0)),               # weights resident
                pl.BlockSpec(b1_bd.shape, lambda i: (0, 0)),
                pl.BlockSpec(w2_bd.shape, lambda i: (0, 0)),
                pl.BlockSpec(b2_bd.shape, lambda i: (0, 0)),
            ],
            out_specs=pl.BlockSpec((block_packed, PACK * L), lambda i: (i, 0)),
        ),
        compiler_params=pltpu.CompilerParams(
            # HBM-bound: both v7x TCs share HBM, so expect <2x; no-op v5e/v6e.
            dimension_semantics=("parallel",)),
        cost_estimate=ce,
    )(x_packed, w1_bd, b1_bd, w2_bd, b2_bd)

    out = out_packed.reshape(Bp, L)
    return out[:B] if pad else out


def init_params(key, num_language_features, nl_project, low_rank_dim):
    """Deterministic init mimicking nn.Linear's uniform(-1/sqrt(fan_in), +)."""
    k1, k2, k3, k4 = jax.random.split(key, 4)
    bound1 = 1.0 / (num_language_features ** 0.5)
    bound2 = 1.0 / (nl_project ** 0.5)
    # stored as [in, out] (transpose of PyTorch's [out, in])
    w1 = jax.random.uniform(k1, (num_language_features, nl_project),
                            jnp.float32, -bound1, bound1)
    b1 = jax.random.uniform(k2, (1, nl_project), jnp.float32, -bound1, bound1)
    w2 = jax.random.uniform(k3, (nl_project, low_rank_dim),
                            jnp.float32, -bound2, bound2)
    b2 = jax.random.uniform(k4, (1, low_rank_dim), jnp.float32, -bound2, bound2)
    return w1, b1, w2, b2


if __name__ == "__main__":
    # Module-consistent shapes
    num_language_features = 32
    nl_project = 64
    low_rank_dim = 16

    key = jax.random.PRNGKey(0)
    kx, kp, kx2 = jax.random.split(key, 3)
    w1, b1, w2, b2 = init_params(kp, num_language_features, nl_project, low_rank_dim)

    def ref_fn(x):
        return jnp.maximum(x @ w1 + b1, 0.0) @ w2 + b2

    # 1) Small-batch path (single no-grid call)
    batch = 8
    x_small = jax.random.normal(kx, (batch, num_language_features), jnp.float32)
    out = jax.block_until_ready(language_mlp1_forward(x_small, w1, b1, w2, b2))
    assert out.shape == (batch, low_rank_dim)
    assert jnp.allclose(out, ref_fn(x_small), atol=1e-5, rtol=1e-5)

    # 2) Large-batch lane-packed path: exercises block-diagonal packing, >=2
    #    grid blocks, ragged last block, and the <8-row tail pad (B % 8 != 0).
    big_batch = 2051
    packed = pack_params(w1, b1, w2, b2)            # precompute once
    x_big = jax.random.normal(kx2, (big_batch, num_language_features), jnp.float32)
    out_big = jax.block_until_ready(
        language_mlp1_forward(x_big, w1, b1, w2, b2, packed_params=packed))
    assert out_big.shape == (big_batch, low_rank_dim)
    assert jnp.allclose(out_big, ref_fn(x_big), atol=1e-5, rtol=1e-5)

    print("KERNEL_OK")
</pallas_src>

<mosaic_0001>
module attributes {stable_mosaic.version = 11 : i64} {
  func.func @_mlp_kernel(%arg0: memref<8x32xf32, #tpu.memory_space<vmem>>, %arg1: memref<32x64xf32, #tpu.memory_space<vmem>>, %arg2: memref<1x64xf32, #tpu.memory_space<vmem>>, %arg3: memref<64x16xf32, #tpu.memory_space<vmem>>, %arg4: memref<1x16xf32, #tpu.memory_space<vmem>>, %arg5: memref<8x16xf32, #tpu.memory_space<vmem>>) attributes {dimension_semantics = [], scalar_prefetch = 0 : i64, scratch_operands = 0 : i64, tpu.core_type = #tpu.core_type<tc>} {
    %c0 = arith.constant 0 : index
    %c0_0 = arith.constant 0 : index
    %0 = vector.load %arg0[%c0, %c0_0] : memref<8x32xf32, #tpu.memory_space<vmem>>, vector<8x32xf32>
    %c0_1 = arith.constant 0 : index
    %c0_2 = arith.constant 0 : index
    %1 = vector.load %arg1[%c0_1, %c0_2] : memref<32x64xf32, #tpu.memory_space<vmem>>, vector<32x64xf32>
    %cst = arith.constant dense<0.000000e+00> : vector<8x64xf32>
    %2 = tpu.matmul %0, %1, %cst {dimension_numbers = #tpu.dot_dimension_numbers<[1], [0], [0], [1], [0, 0, 1, 1], [], []>} : vector<8x32xf32>, vector<32x64xf32>, vector<8x64xf32> -> vector<8x64xf32>
    %c0_3 = arith.constant 0 : index
    %c0_4 = arith.constant 0 : index
    %3 = vector.load %arg2[%c0_3, %c0_4] : memref<1x64xf32, #tpu.memory_space<vmem>>, vector<1x64xf32>
    %4 = vector.broadcast %3 : vector<1x64xf32> to vector<8x64xf32>
    %5 = arith.addf %2, %4 : vector<8x64xf32>
    %cst_5 = arith.constant 0.000000e+00 : f32
    %6 = vector.broadcast %cst_5 : f32 to vector<8x64xf32>
    %7 = arith.maximumf %5, %6 : vector<8x64xf32>
    %c0_6 = arith.constant 0 : index
    %c0_7 = arith.constant 0 : index
    %8 = vector.load %arg3[%c0_6, %c0_7] : memref<64x16xf32, #tpu.memory_space<vmem>>, vector<64x16xf32>
    %cst_8 = arith.constant dense<0.000000e+00> : vector<8x16xf32>
    %9 = tpu.matmul %7, %8, %cst_8 {dimension_numbers = #tpu.dot_dimension_numbers<[1], [0], [0], [1], [0, 0, 1, 1], [], []>} : vector<8x64xf32>, vector<64x16xf32>, vector<8x16xf32> -> vector<8x16xf32>
    %c0_9 = arith.constant 0 : index
    %c0_10 = arith.constant 0 : index
    %10 = vector.load %arg4[%c0_9, %c0_10] : memref<1x16xf32, #tpu.memory_space<vmem>>, vector<1x16xf32>
    %11 = vector.broadcast %10 : vector<1x16xf32> to vector<8x16xf32>
    %12 = arith.addf %9, %11 : vector<8x16xf32>
    %c0_11 = arith.constant 0 : index
    %c0_12 = arith.constant 0 : index
    %13 = vector.load %arg5[%c0_11, %c0_12] : memref<8x16xf32, #tpu.memory_space<vmem>>, vector<8x16xf32>
    tpu.vector_store %arg5[%c0_11, %c0_12], %12 {strides = array<i32>} : memref<8x16xf32, #tpu.memory_space<vmem>>, vector<8x16xf32>,
    return
  }
}

</mosaic_0001>

<bundles_post_ra>
// kernel: tpu_custom_call.1
= control target key start
LH: loop header
LB: loop body
LE: loop exit
PB: predicated region body
PF: predicated region fallthrough
CT: control target
= control target key end

     0   :  { %s219_s0 = inlined_call_operand.vmem [shape: f32[8,32], index: 0, kind: input, shape index: {}]   ;;  %s220_s1 = inlined_call_operand.vmem [shape: f32[32,64], index: 1, kind: input, shape index: {}]   ;;  %s221_s2 = inlined_call_operand.vmem [shape: f32[1,64], index: 2, kind: input, shape index: {}]   ;;  %s222_s3 = inlined_call_operand.vmem [shape: f32[64,16], index: 3, kind: input, shape index: {}]   ;;  %s223_s4 = inlined_call_operand.vmem [shape: f32[1,16], index: 4, kind: input, shape index: {}]   ;;  %s224_s5 = inlined_call_operand.hbm [shape: f32[8,16], index: 5, kind: output, shape index: {}]  }
   0x1   :  { %v25_v0 = vld [vmem:[%s220_s1 + $0x18] sm:$0xff]  ;;  %v24_v1 = vld [vmem:[%s220_s1 + $0x10] sm:$0xff]  ;;  %v23_v3 = vld [vmem:[%s220_s1 + $0x8] sm:$0xff] }
   0x2   :  { %46 = vmatpush.msra.mxu0 %v25_v0  ;;  %v62_v2 = vld [vmem:[%s222_s3 + $0x38] sm:$0xff]  ;;  %v61_v4 = vld [vmem:[%s222_s3 + $0x30] sm:$0xff]  ;;  %v60_v5 = vld [vmem:[%s222_s3 + $0x28] sm:$0xff] }
   0x3   :  { %79 = vmatpush.msra.mxu1 %v62_v2  ;;  %v22_v6 = vld [vmem:[%s220_s1] sm:$0xff] }
   0x4   :  { %47 = vmatpush.msra.mxu0 %v24_v1 }
   0x5   :  { %80 = vmatpush.msra.mxu1 %v61_v4 }
   0x6   :  { %10 = vsyncpa [#allocation3], 0  ;;  %48 = vmatpush.msra.mxu0 %v23_v3  ;;  %v21_v7 = vld [vmem:[%s219_s0] sm:$0xff]  ;;  %vm30_vm0 = vcmask 261120   ;;  %v58_v9 = vld [vmem:[%s222_s3 + $0x18] sm:$0xff]  ;;  %vm67_vm1 = vcmask 523264  }
   0x7   :  { %v59_v8 = vld [vmem:[%s222_s3 + $0x20] sm:$0xff]  ;;  %81 = vmatpush.msra.mxu1 %v60_v5  ;;  %v57_v10 = vld [vmem:[%s222_s3 + $0x10] sm:$0xff]  ;;  %v56_v11 = vld [vmem:[%s222_s3 + $0x8] sm:$0xff]  ;;  %s140_s21 = smov [#allocation2]   ;;  %vm91_vm2 = vcmask 130048  }
   0x8   :  { %49 = vmatpush.msra.mxu0 %v22_v6  ;;  %v55_v12 = vld [vmem:[%s222_s3] sm:$0xff]  ;;  %s98_s22 = sshll.u32 %s140_s21, 4  ;;  %s100_s3 = sshll.u32 %s224_s5, 4  ;;  %s99_s22 = int_to_ptr.vmem [resolvable:$true] %s98_s22  ;;  %s101_s3 = int_to_ptr.hbm [resolvable:$true] %s100_s3 }
   0x9   :  { %109 = vmatmul.msk.f32.vlgmr.msra.gmra.mxu0 %vm30_vm0, %v21_v7  ;;  %82 = vmatpush.msra.mxu1 %v59_v8  ;;  %v112_v13 = vld [vmem:[%s221_s2] ss:$0 sm:$0xff] }
   0xa   :  { %v113_v17 = vld [vmem:[%s223_s4] ss:$0 sm:$0xff] }
   0xb   :  { %83 = vmatpush.msra.mxu1 %v58_v9 }
   0xd   :  { %84 = vmatpush.msra.mxu1 %v57_v10 }
   0xf   :  { %85 = vmatpush.msra.mxu1 %v56_v11 }
  0x11   :  { %86 = vmatpush.msra.mxu1 %v55_v12 }
  0x86   :  { %v51_v14 = vpop.f32.mrf.mxu0 }
  0x87   :  { %v52_v15 = vadd.f32 %v112_v13, %v51_v14 }
  0x89   :  { %v54_v16 = vmax.f32 %v52_v15, 0.0 }
  0x8b   :  { %110 = vmatmul.msk.f32.vlgmr.msra.gmra.mxu1 %vm67_vm1, %v54_v16 }
 0x108   :  { %v88_v18 = vpop.f32.mrf.mxu1 }
 0x109   :  { %v89_v19 = vadd.f32 %v113_v17, %v88_v18 }
 0x10b   :  { %92 = vst.msk [vmem:[#allocation2] sm:$0xff] %vm91_vm2, %v89_v19 }
 0x10c   :  { %103 = dma.vmem_to_hbm [thread:$0]  %s99_s22, 128, %s101_s3, [#allocation3]  }
 0x10d   :  { %138 = dma.done.wait [#allocation3], 128  }
 0x10e   :  { %139 = vsyncadd [#allocation3], 4294967168 }
 0x10f   :  { %108 = vsyncpa [#allocation3], 1 }

</bundles_post_ra>
